<compile_context>
chip_gen: v6e
topology: v6e:2x2x1
jax: 0.10.0
libtpu: 0.0.40
codegen_flags: <defaults>
</compile_context>

<pallas_src>
import functools

import jax
import jax.numpy as jnp
from jax.experimental import pallas as pl
from jax.experimental.pallas import tpu as pltpu

_DEC_TILE = 512          # decoder output-column tile width (multiple of 128)


def _conv_out_len(h):
    # Conv2d kernel (3,1), stride (2,1), padding (1,0) along the audio-window axis.
    return (h + 2 - 3) // 2 + 1


def _round_up(n, m):
    return ((n + m - 1) // m) * m


# ----------------------------------------------------------------------------
# Fused kernel: whole VOCA forward. Invoked once per decoder output-column tile.
#   refs = [pid_smem,
#           bn_scale, bn_shift, x,
#           (conv_w, conv_b) * n_conv,
#           fc1_w, fc1_b, fc2_w, fc2_b,
#           dec_w_tile, dec_b_tile,
#           out_tile,
#           act_scratch * n_conv]
# Conv-branch activation layout (b-major, boundary-padded):
#   row = b*(H+2) + 1 + h  =>  padded row p corresponds to input position p-1, so
#   output position h / tap k reads padded rows 2h + k  ==  strided read (stride 2).
# ----------------------------------------------------------------------------
def _voca_fused_kernel(*refs, B, Hw, F, P, n_conv, hs):
    pid_ref = refs[0]
    scale_ref = refs[1]
    shift_ref = refs[2]
    x_ref = refs[3]
    conv_refs = refs[4:4 + 2 * n_conv]
    base = 4 + 2 * n_conv
    w1, b1, w2, b2, wd, bd = refs[base:base + 6]
    o_ref = refs[base + 6]
    act_refs = refs[base + 7:]

    # ---- person-id one-hot from the SMEM scalar-prefetch arg ----
    lane = jax.lax.broadcasted_iota(jnp.int32, (1, P), 1)
    oh_rows = [(lane == pid_ref[b]).astype(jnp.float32) for b in range(B)]
    pid_oh = jnp.concatenate(oh_rows, axis=0) if B > 1 else oh_rows[0]   # (B, P)

    # ---- stage 0: BN affine + transpose(1,3) + one-hot concat ----
    a0 = act_refs[0]
    a0[...] = jnp.zeros(a0.shape, jnp.float32)          # zero the pad rows
    scale = scale_ref[...]
    shift = shift_ref[...]
    for b in range(B):
        xb = x_ref[b] * scale + shift                    # (Hw, F)
        row = jnp.concatenate(
            [xb, jnp.broadcast_to(oh_rows[b], (Hw, P))], axis=1)
        a0[pl.ds(b * (Hw + 2) + 1, Hw), :] = row

    # ---- conv branch: strided tap reads -> register patch -> one MXU matmul ----
    feat = None
    for i in range(n_conv):
        w_ref = conv_refs[2 * i]
        b_ref = conv_refs[2 * i + 1]
        act = act_refs[i]
        H, h_out = hs[i], hs[i + 1]
        rows = []
        for b in range(B):
            off = b * (H + 2)
            taps = [act[pl.ds(off + k, h_out, stride=2), :] for k in range(3)]
            rows.append(jnp.concatenate(taps, axis=1))   # (h_out, 3*C_in), tap-major
        patch = jnp.concatenate(rows, axis=0) if B > 1 else rows[0]
        y = jnp.dot(patch, w_ref[...], preferred_element_type=jnp.float32)
        y = jnp.maximum(y + b_ref[...], 0.0)             # bias + ReLU, (B*h_out, C_out)
        if i + 1 < n_conv:
            nxt = act_refs[i + 1]
            nxt[...] = jnp.zeros(nxt.shape, jnp.float32)  # zero the pad rows
            for b in range(B):
                nxt[pl.ds(b * (h_out + 2) + 1, h_out), :] = \
                    y[b * h_out:(b + 1) * h_out, :]
        else:
            feat = y                                      # (B, C_last): window collapsed to 1

    # ---- encoder head + decoder tile (kept separate to preserve exact rounding) ----
    enc = jnp.concatenate([feat, pid_oh], axis=1)         # (B, C_last + P), in registers
    h1 = jnp.tanh(jnp.dot(enc, w1[...], preferred_element_type=jnp.float32) + b1[...])
    h2 = jnp.dot(h1, w2[...], preferred_element_type=jnp.float32) + b2[...]
    out = jnp.dot(h2, wd[...], preferred_element_type=jnp.float32) + bd[...]
    o_ref[...] = out.astype(o_ref.dtype)


# ----------------------------------------------------------------------------
# Deterministic parameter init (shapes follow the PyTorch module __init__)
# ----------------------------------------------------------------------------
def init_voca_params(key, audio_features, base_persons, encoder_features, vertices):
    channels = (32, 32, 64, 64)
    fc1_channels = 128
    params = {}

    # BatchNorm2d(num_features=1), inference-mode defaults
    params["bn"] = dict(gamma=jnp.ones((1,), jnp.float32),
                        beta=jnp.zeros((1,), jnp.float32),
                        mean=jnp.zeros((1,), jnp.float32),
                        var=jnp.ones((1,), jnp.float32),
                        eps=1e-5)

    in_ch = audio_features + base_persons
    convs = []
    for out_ch in channels:
        key, kw = jax.random.split(key)
        fan_in = in_ch * 3
        bound = (6.0 / fan_in) ** 0.5                      # kaiming_uniform
        w = jax.random.uniform(kw, (out_ch, in_ch, 3, 1), jnp.float32, -bound, bound)
        b = jnp.zeros((out_ch,), jnp.float32)              # init.constant_(bias, 0)
        convs.append((w, b))
        in_ch = out_ch
    params["convs"] = convs

    def linear(k, fin, fout):
        k1, k2 = jax.random.split(k)
        bound = 1.0 / (fin ** 0.5)
        w = jax.random.uniform(k1, (fout, fin), jnp.float32, -bound, bound)
        b = jax.random.uniform(k2, (fout,), jnp.float32, -bound, bound)
        return w, b

    key, k1, k2, k3 = jax.random.split(key, 4)
    params["fc1"] = linear(k1, in_ch + base_persons, fc1_channels)
    params["fc2"] = linear(k2, fc1_channels, encoder_features)
    params["decoder"] = linear(k3, encoder_features, 3 * vertices)
    return params


# ----------------------------------------------------------------------------
# One-time weight pre-packing (done once at setup, NOT per forward call)
# weight_dtype=jnp.bfloat16 halves the weight HBM->VMEM bytes (v5e/v6e lever);
# default f32 preserves the reference rounding within rtol=1e-4.
# ----------------------------------------------------------------------------
def pack_voca_params(params, weight_dtype=jnp.float32):
    bn = params["bn"]
    scale = bn["gamma"] * jax.lax.rsqrt(bn["var"] + bn["eps"])
    shift = bn["beta"] - bn["mean"] * scale
    packed = {
        "bn_scale": scale.reshape(1, 1).astype(jnp.float32),
        "bn_shift": shift.reshape(1, 1).astype(jnp.float32),
        "convs": [],
    }
    for (w, b) in params["convs"]:
        c_out, c_in = w.shape[0], w.shape[1]
        # (C_out, C_in, 3, 1) -> (3*C_in, C_out), row = k*C_in + c_in (tap-major),
        # matching the in-kernel tap-major patch column order.
        wp = jnp.transpose(w[:, :, :, 0], (2, 1, 0)).reshape(3 * c_in, c_out)
        packed["convs"].append((wp.astype(weight_dtype),
                                b.reshape(1, c_out).astype(jnp.float32)))
    for name in ("fc1", "fc2"):
        w, b = params[name]
        packed[name] = (w.T.astype(weight_dtype), b.reshape(1, -1).astype(jnp.float32))
    wd, bd = params["decoder"]
    wdt = wd.T.astype(weight_dtype)                        # (E, 3*V)
    n_out = wdt.shape[1]
    n_pad = _round_up(n_out, 128)                          # lane-dense final store
    if n_pad > _DEC_TILE:
        n_pad = _round_up(n_out, _DEC_TILE)                # gridded decoder tiles
    packed["dec"] = (jnp.pad(wdt, ((0, 0), (0, n_pad - n_out))),
                     jnp.pad(bd.astype(jnp.float32), (0, n_pad - n_out)).reshape(1, -1))
    return packed


# ----------------------------------------------------------------------------
# VOCA forward: one fused pallas_call, gridded over decoder output-column tiles
# ----------------------------------------------------------------------------
def voca_forward(packed, x, pid, *, audio_window_size, base_persons, vertices):
    B, _, Hw, F = x.shape
    P = base_persons
    assert Hw == audio_window_size
    channels = tuple(w.shape[1] for (w, _) in packed["convs"])
    n_conv = len(channels)

    # Window length after each strided conv; the module requires a collapse to 1.
    hs = [Hw]
    for _ in range(n_conv):
        hs.append(_conv_out_len(hs[-1]))
    assert hs[-1] == 1, "VOCA branch must reduce the audio window to a single step"
    assert packed["fc1"][0].shape[0] == channels[-1] + P

    x3 = x[:, 0, :, :].astype(jnp.float32)                 # (B, Hw, F)
    pid_i32 = pid.astype(jnp.int32)                        # SMEM scalar-prefetch arg

    wd_pad, bd_pad = packed["dec"]
    n_pad = wd_pad.shape[1]                                # multiple of tile / 128
    tn = min(_DEC_TILE, n_pad)
    assert n_pad % tn == 0
    grid = (n_pad // tn,)

    inputs = [packed["bn_scale"], packed["bn_shift"], x3]
    for wb in packed["convs"]:
        inputs += list(wb)
    inputs += list(packed["fc1"]) + list(packed["fc2"])

    def whole_spec(arr):
        zeros = (0,) * arr.ndim
        return pl.BlockSpec(arr.shape, lambda j, pid_s, z=zeros: z)

    in_specs = [whole_spec(a) for a in inputs]             # loaded once, reused per tile
    in_specs += [pl.BlockSpec((wd_pad.shape[0], tn), lambda j, pid_s: (0, j)),
                 pl.BlockSpec((1, tn), lambda j, pid_s: (0, j))]
    inputs += [wd_pad, bd_pad]
    out_spec = pl.BlockSpec((B, tn), lambda j, pid_s: (0, j))

    in_ch = [F + P] + list(channels[:-1])
    scratch_shapes = [pltpu.VMEM(((hs[i] + 2) * B, in_ch[i]), jnp.float32)
                      for i in range(n_conv)]              # tiny padded act buffers

    kernel = functools.partial(_voca_fused_kernel, B=B, Hw=Hw, F=F, P=P,
                               n_conv=n_conv, hs=tuple(hs))
    out = pl.pallas_call(
        kernel,
        out_shape=jax.ShapeDtypeStruct((B, n_pad), jnp.float32),
        grid_spec=pltpu.PrefetchScalarGridSpec(
            num_scalar_prefetch=1,
            grid=grid,
            in_specs=in_specs,
            out_specs=out_spec,
            scratch_shapes=scratch_shapes),
        compiler_params=pltpu.CompilerParams(
            dimension_semantics=("parallel",)),             # v7x: shard tiles over 2 TCs
    )(pid_i32, *inputs)
    out = out[:, :3 * vertices]
    return out.reshape(B, 1, vertices, 3)


# ----------------------------------------------------------------------------
# Pure-JAX reference (lax.conv) for a correctness check
# ----------------------------------------------------------------------------
def voca_reference(params, x, pid, *, audio_window_size, base_persons, vertices):
    B = x.shape[0]
    pid_oh = jax.nn.one_hot(pid, base_persons, dtype=jnp.float32)
    bn = params["bn"]
    h = (x - bn["mean"]) * jax.lax.rsqrt(bn["var"] + bn["eps"]) * bn["gamma"] + bn["beta"]
    h = jnp.transpose(h, (0, 3, 2, 1))                      # (B, F, Hw, 1)
    y = jnp.broadcast_to(pid_oh[:, :, None, None],
                         (B, base_persons, audio_window_size, 1))
    h = jnp.concatenate([h, y], axis=1)
    for (w, b) in params["convs"]:
        h = jax.lax.conv_general_dilated(
            h, w, window_strides=(2, 1), padding=((1, 1), (0, 0)),
            dimension_numbers=("NCHW", "OIHW", "NCHW"))
        h = jax.nn.relu(h + b.reshape(1, -1, 1, 1))
    h = h.reshape(B, -1)
    h = jnp.concatenate([h, pid_oh], axis=1)
    w1, b1 = params["fc1"]; h = jnp.tanh(h @ w1.T + b1)
    w2, b2 = params["fc2"]; h = h @ w2.T + b2
    wd, bd = params["decoder"]; h = h @ wd.T + bd
    return h.reshape(B, 1, vertices, 3)


if __name__ == "__main__":
    # Small config consistent with the module's forward pass.
    audio_features = 12
    audio_window_size = 8      # halved by each of the 4 strided convs: 8->4->2->1->1
    base_persons = 4
    encoder_features = 16
    vertices = 40
    B = 2

    key = jax.random.PRNGKey(0)
    kx, kp, kparams = jax.random.split(key, 3)
    x = jax.random.normal(kx, (B, 1, audio_window_size, audio_features), jnp.float32)
    pid = jax.random.randint(kp, (B,), 0, base_persons)

    params = init_voca_params(kparams, audio_features, base_persons,
                              encoder_features, vertices)
    packed = pack_voca_params(params)            # one-time weight pre-packing (f32)

    fwd = jax.jit(functools.partial(voca_forward,
                                    audio_window_size=audio_window_size,
                                    base_persons=base_persons,
                                    vertices=vertices))
    out = jax.block_until_ready(fwd(packed, x, pid))

    ref = voca_reference(params, x, pid,
                         audio_window_size=audio_window_size,
                         base_persons=base_persons, vertices=vertices)

    assert out.shape == (B, 1, vertices, 3), out.shape
    assert jnp.allclose(out, ref, rtol=1e-4, atol=1e-4), "mismatch vs JAX reference"
    print("KERNEL_OK")
</pallas_src>

<mosaic_0001>
module attributes {stable_mosaic.version = 11 : i64} {
  func.func @_voca_fused_kernel(%arg0: i32, %arg1: memref<2xi32, #tpu.memory_space<smem>>, %arg2: memref<1x1xf32, #tpu.memory_space<vmem>>, %arg3: memref<1x1xf32, #tpu.memory_space<vmem>>, %arg4: memref<2x8x12xf32, #tpu.memory_space<vmem>>, %arg5: memref<48x32xf32, #tpu.memory_space<vmem>>, %arg6: memref<1x32xf32, #tpu.memory_space<vmem>>, %arg7: memref<96x32xf32, #tpu.memory_space<vmem>>, %arg8: memref<1x32xf32, #tpu.memory_space<vmem>>, %arg9: memref<96x64xf32, #tpu.memory_space<vmem>>, %arg10: memref<1x64xf32, #tpu.memory_space<vmem>>, %arg11: memref<192x64xf32, #tpu.memory_space<vmem>>, %arg12: memref<1x64xf32, #tpu.memory_space<vmem>>, %arg13: memref<68x128xf32, #tpu.memory_space<vmem>>, %arg14: memref<1x128xf32, #tpu.memory_space<vmem>>, %arg15: memref<128x16xf32, #tpu.memory_space<vmem>>, %arg16: memref<1x16xf32, #tpu.memory_space<vmem>>, %arg17: memref<16x128xf32, #tpu.memory_space<vmem>>, %arg18: memref<1x128xf32, #tpu.memory_space<vmem>>, %arg19: memref<2x128xf32, #tpu.memory_space<vmem>>, %arg20: memref<20x16xf32, #tpu.memory_space<vmem>>, %arg21: memref<12x32xf32, #tpu.memory_space<vmem>>, %arg22: memref<8x32xf32, #tpu.memory_space<vmem>>, %arg23: memref<6x64xf32, #tpu.memory_space<vmem>>) attributes {dimension_semantics = [#tpu.dimension_semantics<parallel>], iteration_bounds = array<i64: 1>, scalar_prefetch = 1 : i64, scratch_operands = 4 : i64, tpu.core_type = #tpu.core_type<tc>, window_params = [{pipeline_mode = #tpu.pipeline_mode<synchronous>, transform_indices = @transform_0, window_bounds = array<i64: 1, 1>}, {pipeline_mode = #tpu.pipeline_mode<synchronous>, transform_indices = @transform_1, window_bounds = array<i64: 1, 1>}, {pipeline_mode = #tpu.pipeline_mode<synchronous>, transform_indices = @transform_2, window_bounds = array<i64: 2, 8, 12>}, {pipeline_mode = #tpu.pipeline_mode<synchronous>, transform_indices = @transform_3, window_bounds = array<i64: 48, 32>}, {pipeline_mode = #tpu.pipeline_mode<synchronous>, transform_indices = @transform_4, window_bounds = array<i64: 1, 32>}, {pipeline_mode = #tpu.pipeline_mode<synchronous>, transform_indices = @transform_5, window_bounds = array<i64: 96, 32>}, {pipeline_mode = #tpu.pipeline_mode<synchronous>, transform_indices = @transform_6, window_bounds = array<i64: 1, 32>}, {pipeline_mode = #tpu.pipeline_mode<synchronous>, transform_indices = @transform_7, window_bounds = array<i64: 96, 64>}, {pipeline_mode = #tpu.pipeline_mode<synchronous>, transform_indices = @transform_8, window_bounds = array<i64: 1, 64>}, {pipeline_mode = #tpu.pipeline_mode<synchronous>, transform_indices = @transform_9, window_bounds = array<i64: 192, 64>}, {pipeline_mode = #tpu.pipeline_mode<synchronous>, transform_indices = @transform_10, window_bounds = array<i64: 1, 64>}, {pipeline_mode = #tpu.pipeline_mode<synchronous>, transform_indices = @transform_11, window_bounds = array<i64: 68, 128>}, {pipeline_mode = #tpu.pipeline_mode<synchronous>, transform_indices = @transform_12, window_bounds = array<i64: 1, 128>}, {pipeline_mode = #tpu.pipeline_mode<synchronous>, transform_indices = @transform_13, window_bounds = array<i64: 128, 16>}, {pipeline_mode = #tpu.pipeline_mode<synchronous>, transform_indices = @transform_14, window_bounds = array<i64: 1, 16>}, {transform_indices = @transform_15, window_bounds = array<i64: 16, 128>}, {transform_indices = @transform_16, window_bounds = array<i64: 1, 128>}, {transform_indices = @transform_17, window_bounds = array<i64: 2, 128>}]} {
    %0 = tpu.iota {dimensions = array<i32: 1>} : vector<1x4xi32>
    %c0 = arith.constant 0 : index
    %1 = memref.load %arg1[%c0] : memref<2xi32, #tpu.memory_space<smem>>
    %2 = vector.broadcast %1 : i32 to vector<1x4xi32>
    %3 = arith.cmpi eq, %0, %2 : vector<1x4xi32>
    %4 = arith.extui %3 : vector<1x4xi1> to vector<1x4xi32>
    %5 = arith.sitofp %4 : vector<1x4xi32> to vector<1x4xf32>
    %c1 = arith.constant 1 : index
    %6 = memref.load %arg1[%c1] : memref<2xi32, #tpu.memory_space<smem>>
    %7 = vector.broadcast %6 : i32 to vector<1x4xi32>
    %8 = arith.cmpi eq, %0, %7 : vector<1x4xi32>
    %9 = arith.extui %8 : vector<1x4xi1> to vector<1x4xi32>
    %10 = arith.sitofp %9 : vector<1x4xi32> to vector<1x4xf32>
    %11 = tpu.concatenate %5, %10 in 0 : vector<1x4xf32>, vector<1x4xf32> -> vector<2x4xf32>
    %cst = arith.constant 0.000000e+00 : f32
    %12 = vector.broadcast %cst : f32 to vector<20x16xf32>
    %c0_0 = arith.constant 0 : index
    %c0_1 = arith.constant 0 : index
    %13 = vector.load %arg20[%c0_0, %c0_1] : memref<20x16xf32, #tpu.memory_space<vmem>>, vector<20x16xf32>
    tpu.vector_store %arg20[%c0_0, %c0_1], %12 {strides = array<i32>} : memref<20x16xf32, #tpu.memory_space<vmem>>, vector<20x16xf32>,
    %c0_2 = arith.constant 0 : index
    %c0_3 = arith.constant 0 : index
    %14 = vector.load %arg2[%c0_2, %c0_3] : memref<1x1xf32, #tpu.memory_space<vmem>>, vector<1x1xf32>
    %c0_4 = arith.constant 0 : index
    %c0_5 = arith.constant 0 : index
    %15 = vector.load %arg3[%c0_4, %c0_5] : memref<1x1xf32, #tpu.memory_space<vmem>>, vector<1x1xf32>
    %c0_6 = arith.constant 0 : index
    %c0_7 = arith.constant 0 : index
    %c0_8 = arith.constant 0 : index
    %16 = vector.load %arg4[%c0_6, %c0_7, %c0_8] : memref<2x8x12xf32, #tpu.memory_space<vmem>>, vector<1x8x12xf32>
    %17 = vector.shape_cast %16 : vector<1x8x12xf32> to vector<8x12xf32>
    %18 = vector.broadcast %14 : vector<1x1xf32> to vector<8x12xf32>
    %19 = arith.mulf %17, %18 : vector<8x12xf32>
    %20 = vector.broadcast %15 : vector<1x1xf32> to vector<8x12xf32>
    %21 = arith.addf %19, %20 : vector<8x12xf32>
    %22 = vector.shape_cast %5 : vector<1x4xf32> to vector<1x4xf32>
    %23 = vector.broadcast %22 : vector<1x4xf32> to vector<8x4xf32>
    %24 = tpu.concatenate %21, %23 in 1 : vector<8x12xf32>, vector<8x4xf32> -> vector<8x16xf32>
    %c1_9 = arith.constant 1 : index
    %c0_10 = arith.constant 0 : index
    %25 = vector.load %arg20[%c1_9, %c0_10] : memref<20x16xf32, #tpu.memory_space<vmem>>, vector<8x16xf32>
    tpu.vector_store %arg20[%c1_9, %c0_10], %24 {strides = array<i32>} : memref<20x16xf32, #tpu.memory_space<vmem>>, vector<8x16xf32>,
    %c1_11 = arith.constant 1 : index
    %c0_12 = arith.constant 0 : index
    %c0_13 = arith.constant 0 : index
    %26 = vector.load %arg4[%c1_11, %c0_12, %c0_13] : memref<2x8x12xf32, #tpu.memory_space<vmem>>, vector<1x8x12xf32>
    %27 = vector.shape_cast %26 : vector<1x8x12xf32> to vector<8x12xf32>
    %28 = vector.broadcast %14 : vector<1x1xf32> to vector<8x12xf32>
    %29 = arith.mulf %27, %28 : vector<8x12xf32>
    %30 = vector.broadcast %15 : vector<1x1xf32> to vector<8x12xf32>
    %31 = arith.addf %29, %30 : vector<8x12xf32>
    %32 = vector.shape_cast %10 : vector<1x4xf32> to vector<1x4xf32>
    %33 = vector.broadcast %32 : vector<1x4xf32> to vector<8x4xf32>
    %34 = tpu.concatenate %31, %33 in 1 : vector<8x12xf32>, vector<8x4xf32> -> vector<8x16xf32>
    %c11 = arith.constant 11 : index
    %c0_14 = arith.constant 0 : index
    %35 = vector.load %arg20[%c11, %c0_14] : memref<20x16xf32, #tpu.memory_space<vmem>>, vector<8x16xf32>
    tpu.vector_store %arg20[%c11, %c0_14], %34 {strides = array<i32>} : memref<20x16xf32, #tpu.memory_space<vmem>>, vector<8x16xf32>,
    %c0_15 = arith.constant 0 : index
    %c0_16 = arith.constant 0 : index
    %36 = tpu.strided_load %arg20[%c0_15, %c0_16] {strides = array<i32: 2, 1>} : memref<20x16xf32, #tpu.memory_space<vmem>>, vector<4x16xf32>
    %c1_17 = arith.constant 1 : index
    %c0_18 = arith.constant 0 : index
    %37 = tpu.strided_load %arg20[%c1_17, %c0_18] {strides = array<i32: 2, 1>} : memref<20x16xf32, #tpu.memory_space<vmem>>, vector<4x16xf32>
    %c2 = arith.constant 2 : index
    %c0_19 = arith.constant 0 : index
    %38 = tpu.strided_load %arg20[%c2, %c0_19] {strides = array<i32: 2, 1>} : memref<20x16xf32, #tpu.memory_space<vmem>>, vector<4x16xf32>
    %39 = tpu.concatenate %36, %37, %38 in 1 : vector<4x16xf32>, vector<4x16xf32>, vector<4x16xf32> -> vector<4x48xf32>
    %c10 = arith.constant 10 : index
    %c0_20 = arith.constant 0 : index
    %40 = tpu.strided_load %arg20[%c10, %c0_20] {strides = array<i32: 2, 1>} : memref<20x16xf32, #tpu.memory_space<vmem>>, vector<4x16xf32>
    %c11_21 = arith.constant 11 : index
    %c0_22 = arith.constant 0 : index
    %41 = tpu.strided_load %arg20[%c11_21, %c0_22] {strides = array<i32: 2, 1>} : memref<20x16xf32, #tpu.memory_space<vmem>>, vector<4x16xf32>
    %c12 = arith.constant 12 : index
    %c0_23 = arith.constant 0 : index
    %42 = tpu.strided_load %arg20[%c12, %c0_23] {strides = array<i32: 2, 1>} : memref<20x16xf32, #tpu.memory_space<vmem>>, vector<4x16xf32>
    %43 = tpu.concatenate %40, %41, %42 in 1 : vector<4x16xf32>, vector<4x16xf32>, vector<4x16xf32> -> vector<4x48xf32>
    %44 = tpu.concatenate %39, %43 in 0 : vector<4x48xf32>, vector<4x48xf32> -> vector<8x48xf32>
    %c0_24 = arith.constant 0 : index
    %c0_25 = arith.constant 0 : index
    %45 = vector.load %arg5[%c0_24, %c0_25] : memref<48x32xf32, #tpu.memory_space<vmem>>, vector<48x32xf32>
    %cst_26 = arith.constant dense<0.000000e+00> : vector<8x32xf32>
    %46 = tpu.matmul %44, %45, %cst_26 {dimension_numbers = #tpu.dot_dimension_numbers<[1], [0], [0], [1], [0, 0, 1, 1], [], []>} : vector<8x48xf32>, vector<48x32xf32>, vector<8x32xf32> -> vector<8x32xf32>
    %c0_27 = arith.constant 0 : index
    %c0_28 = arith.constant 0 : index
    %47 = vector.load %arg6[%c0_27, %c0_28] : memref<1x32xf32, #tpu.memory_space<vmem>>, vector<1x32xf32>
    %48 = vector.broadcast %47 : vector<1x32xf32> to vector<8x32xf32>
    %49 = arith.addf %46, %48 : vector<8x32xf32>
    %cst_29 = arith.constant 0.000000e+00 : f32
    %50 = vector.broadcast %cst_29 : f32 to vector<8x32xf32>
    %51 = arith.maximumf %49, %50 : vector<8x32xf32>
    %cst_30 = arith.constant 0.000000e+00 : f32
    %52 = vector.broadcast %cst_30 : f32 to vector<12x32xf32>
    %c0_31 = arith.constant 0 : index
    %c0_32 = arith.constant 0 : index
    %53 = vector.load %arg21[%c0_31, %c0_32] : memref<12x32xf32, #tpu.memory_space<vmem>>, vector<12x32xf32>
    tpu.vector_store %arg21[%c0_31, %c0_32], %52 {strides = array<i32>} : memref<12x32xf32, #tpu.memory_space<vmem>>, vector<12x32xf32>,
    %54 = vector.extract_strided_slice %51 {offsets = [0, 0], sizes = [4, 32], strides = [1, 1]} : vector<8x32xf32> to vector<4x32xf32>
    %c1_33 = arith.constant 1 : index
    %c0_34 = arith.constant 0 : index
    %55 = vector.load %arg21[%c1_33, %c0_34] : memref<12x32xf32, #tpu.memory_space<vmem>>, vector<4x32xf32>
    tpu.vector_store %arg21[%c1_33, %c0_34], %54 {strides = array<i32>} : memref<12x32xf32, #tpu.memory_space<vmem>>, vector<4x32xf32>,
    %56 = vector.extract_strided_slice %51 {offsets = [4, 0], sizes = [4, 32], strides = [1, 1]} : vector<8x32xf32> to vector<4x32xf32>
    %c7 = arith.constant 7 : index
    %c0_35 = arith.constant 0 : index
    %57 = vector.load %arg21[%c7, %c0_35] : memref<12x32xf32, #tpu.memory_space<vmem>>, vector<4x32xf32>
    tpu.vector_store %arg21[%c7, %c0_35], %56 {strides = array<i32>} : memref<12x32xf32, #tpu.memory_space<vmem>>, vector<4x32xf32>,
    %c0_36 = arith.constant 0 : index
    %c0_37 = arith.constant 0 : index
    %58 = tpu.strided_load %arg21[%c0_36, %c0_37] {strides = array<i32: 2, 1>} : memref<12x32xf32, #tpu.memory_space<vmem>>, vector<2x32xf32>
    %c1_38 = arith.constant 1 : index
    %c0_39 = arith.constant 0 : index
    %59 = tpu.strided_load %arg21[%c1_38, %c0_39] {strides = array<i32: 2, 1>} : memref<12x32xf32, #tpu.memory_space<vmem>>, vector<2x32xf32>
    %c2_40 = arith.constant 2 : index
    %c0_41 = arith.constant 0 : index
    %60 = tpu.strided_load %arg21[%c2_40, %c0_41] {strides = array<i32: 2, 1>} : memref<12x32xf32, #tpu.memory_space<vmem>>, vector<2x32xf32>
    %61 = tpu.concatenate %58, %59, %60 in 1 : vector<2x32xf32>, vector<2x32xf32>, vector<2x32xf32> -> vector<2x96xf32>
    %c6 = arith.constant 6 : index
    %c0_42 = arith.constant 0 : index
    %62 = tpu.strided_load %arg21[%c6, %c0_42] {strides = array<i32: 2, 1>} : memref<12x32xf32, #tpu.memory_space<vmem>>, vector<2x32xf32>
    %c7_43 = arith.constant 7 : index
    %c0_44 = arith.constant 0 : index
    %63 = tpu.strided_load %arg21[%c7_43, %c0_44] {strides = array<i32: 2, 1>} : memref<12x32xf32, #tpu.memory_space<vmem>>, vector<2x32xf32>
    %c8 = arith.constant 8 : index
    %c0_45 = arith.constant 0 : index
    %64 = tpu.strided_load %arg21[%c8, %c0_45] {strides = array<i32: 2, 1>} : memref<12x32xf32, #tpu.memory_space<vmem>>, vector<2x32xf32>
    %65 = tpu.concatenate %62, %63, %64 in 1 : vector<2x32xf32>, vector<2x32xf32>, vector<2x32xf32> -> vector<2x96xf32>
    %66 = tpu.concatenate %61, %65 in 0 : vector<2x96xf32>, vector<2x96xf32> -> vector<4x96xf32>
    %c0_46 = arith.constant 0 : index
    %c0_47 = arith.constant 0 : index
    %67 = vector.load %arg7[%c0_46, %c0_47] : memref<96x32xf32, #tpu.memory_space<vmem>>, vector<96x32xf32>
    %cst_48 = arith.constant dense<0.000000e+00> : vector<4x32xf32>
    %68 = tpu.matmul %66, %67, %cst_48 {dimension_numbers = #tpu.dot_dimension_numbers<[1], [0], [0], [1], [0, 0, 1, 1], [], []>} : vector<4x96xf32>, vector<96x32xf32>, vector<4x32xf32> -> vector<4x32xf32>
    %c0_49 = arith.constant 0 : index
    %c0_50 = arith.constant 0 : index
    %69 = vector.load %arg8[%c0_49, %c0_50] : memref<1x32xf32, #tpu.memory_space<vmem>>, vector<1x32xf32>
    %70 = vector.broadcast %69 : vector<1x32xf32> to vector<4x32xf32>
    %71 = arith.addf %68, %70 : vector<4x32xf32>
    %cst_51 = arith.constant 0.000000e+00 : f32
    %72 = vector.broadcast %cst_51 : f32 to vector<4x32xf32>
    %73 = arith.maximumf %71, %72 : vector<4x32xf32>
    %cst_52 = arith.constant 0.000000e+00 : f32
    %74 = vector.broadcast %cst_52 : f32 to vector<8x32xf32>
    %c0_53 = arith.constant 0 : index
    %c0_54 = arith.constant 0 : index
    %75 = vector.load %arg22[%c0_53, %c0_54] : memref<8x32xf32, #tpu.memory_space<vmem>>, vector<8x32xf32>
    tpu.vector_store %arg22[%c0_53, %c0_54], %74 {strides = array<i32>} : memref<8x32xf32, #tpu.memory_space<vmem>>, vector<8x32xf32>,
    %76 = vector.extract_strided_slice %73 {offsets = [0, 0], sizes = [2, 32], strides = [1, 1]} : vector<4x32xf32> to vector<2x32xf32>
    %c1_55 = arith.constant 1 : index
    %c0_56 = arith.constant 0 : index
    %77 = vector.load %arg22[%c1_55, %c0_56] : memref<8x32xf32, #tpu.memory_space<vmem>>, vector<2x32xf32>
    tpu.vector_store %arg22[%c1_55, %c0_56], %76 {strides = array<i32>} : memref<8x32xf32, #tpu.memory_space<vmem>>, vector<2x32xf32>,
    %78 = vector.extract_strided_slice %73 {offsets = [2, 0], sizes = [2, 32], strides = [1, 1]} : vector<4x32xf32> to vector<2x32xf32>
    %c5 = arith.constant 5 : index
    %c0_57 = arith.constant 0 : index
    %79 = vector.load %arg22[%c5, %c0_57] : memref<8x32xf32, #tpu.memory_space<vmem>>, vector<2x32xf32>
    tpu.vector_store %arg22[%c5, %c0_57], %78 {strides = array<i32>} : memref<8x32xf32, #tpu.memory_space<vmem>>, vector<2x32xf32>,
    %c0_58 = arith.constant 0 : index
    %c0_59 = arith.constant 0 : index
    %80 = tpu.strided_load %arg22[%c0_58, %c0_59] {strides = array<i32: 2, 1>} : memref<8x32xf32, #tpu.memory_space<vmem>>, vector<1x32xf32>
    %c1_60 = arith.constant 1 : index
    %c0_61 = arith.constant 0 : index
    %81 = tpu.strided_load %arg22[%c1_60, %c0_61] {strides = array<i32: 2, 1>} : memref<8x32xf32, #tpu.memory_space<vmem>>, vector<1x32xf32>
    %c2_62 = arith.constant 2 : index
    %c0_63 = arith.constant 0 : index
    %82 = tpu.strided_load %arg22[%c2_62, %c0_63] {strides = array<i32: 2, 1>} : memref<8x32xf32, #tpu.memory_space<vmem>>, vector<1x32xf32>
    %83 = tpu.concatenate %80, %81, %82 in 1 : vector<1x32xf32>, vector<1x32xf32>, vector<1x32xf32> -> vector<1x96xf32>
    %c4 = arith.constant 4 : index
    %c0_64 = arith.constant 0 : index
    %84 = tpu.strided_load %arg22[%c4, %c0_64] {strides = array<i32: 2, 1>} : memref<8x32xf32, #tpu.memory_space<vmem>>, vector<1x32xf32>
    %c5_65 = arith.constant 5 : index
    %c0_66 = arith.constant 0 : index
    %85 = tpu.strided_load %arg22[%c5_65, %c0_66] {strides = array<i32: 2, 1>} : memref<8x32xf32, #tpu.memory_space<vmem>>, vector<1x32xf32>
    %c6_67 = arith.constant 6 : index
    %c0_68 = arith.constant 0 : index
    %86 = tpu.strided_load %arg22[%c6_67, %c0_68] {strides = array<i32: 2, 1>} : memref<8x32xf32, #tpu.memory_space<vmem>>, vector<1x32xf32>
    %87 = tpu.concatenate %84, %85, %86 in 1 : vector<1x32xf32>, vector<1x32xf32>, vector<1x32xf32> -> vector<1x96xf32>
    %88 = tpu.concatenate %83, %87 in 0 : vector<1x96xf32>, vector<1x96xf32> -> vector<2x96xf32>
    %c0_69 = arith.constant 0 : index
    %c0_70 = arith.constant 0 : index
    %89 = vector.load %arg9[%c0_69, %c0_70] : memref<96x64xf32, #tpu.memory_space<vmem>>, vector<96x64xf32>
    %cst_71 = arith.constant dense<0.000000e+00> : vector<2x64xf32>
    %90 = tpu.matmul %88, %89, %cst_71 {dimension_numbers = #tpu.dot_dimension_numbers<[1], [0], [0], [1], [0, 0, 1, 1], [], []>} : vector<2x96xf32>, vector<96x64xf32>, vector<2x64xf32> -> vector<2x64xf32>
    %c0_72 = arith.constant 0 : index
    %c0_73 = arith.constant 0 : index
    %91 = vector.load %arg10[%c0_72, %c0_73] : memref<1x64xf32, #tpu.memory_space<vmem>>, vector<1x64xf32>
    %92 = vector.broadcast %91 : vector<1x64xf32> to vector<2x64xf32>
    %93 = arith.addf %90, %92 : vector<2x64xf32>
    %cst_74 = arith.constant 0.000000e+00 : f32
    %94 = vector.broadcast %cst_74 : f32 to vector<2x64xf32>
    %95 = arith.maximumf %93, %94 : vector<2x64xf32>
    %cst_75 = arith.constant 0.000000e+00 : f32
    %96 = vector.broadcast %cst_75 : f32 to vector<6x64xf32>
    %c0_76 = arith.constant 0 : index
    %c0_77 = arith.constant 0 : index
    %97 = vector.load %arg23[%c0_76, %c0_77] : memref<6x64xf32, #tpu.memory_space<vmem>>, vector<6x64xf32>
    tpu.vector_store %arg23[%c0_76, %c0_77], %96 {strides = array<i32>} : memref<6x64xf32, #tpu.memory_space<vmem>>, vector<6x64xf32>,
    %98 = vector.extract_strided_slice %95 {offsets = [0, 0], sizes = [1, 64], strides = [1, 1]} : vector<2x64xf32> to vector<1x64xf32>
    %c1_78 = arith.constant 1 : index
    %c0_79 = arith.constant 0 : index
    %99 = vector.load %arg23[%c1_78, %c0_79] : memref<6x64xf32, #tpu.memory_space<vmem>>, vector<1x64xf32>
    tpu.vector_store %arg23[%c1_78, %c0_79], %98 {strides = array<i32>} : memref<6x64xf32, #tpu.memory_space<vmem>>, vector<1x64xf32>,
    %100 = vector.extract_strided_slice %95 {offsets = [1, 0], sizes = [1, 64], strides = [1, 1]} : vector<2x64xf32> to vector<1x64xf32>
    %c4_80 = arith.constant 4 : index
    %c0_81 = arith.constant 0 : index
    %101 = vector.load %arg23[%c4_80, %c0_81] : memref<6x64xf32, #tpu.memory_space<vmem>>, vector<1x64xf32>
    tpu.vector_store %arg23[%c4_80, %c0_81], %100 {strides = array<i32>} : memref<6x64xf32, #tpu.memory_space<vmem>>, vector<1x64xf32>,
    %c0_82 = arith.constant 0 : index
    %c0_83 = arith.constant 0 : index
    %102 = tpu.strided_load %arg23[%c0_82, %c0_83] {strides = array<i32: 2, 1>} : memref<6x64xf32, #tpu.memory_space<vmem>>, vector<1x64xf32>
    %c1_84 = arith.constant 1 : index
    %c0_85 = arith.constant 0 : index
    %103 = tpu.strided_load %arg23[%c1_84, %c0_85] {strides = array<i32: 2, 1>} : memref<6x64xf32, #tpu.memory_space<vmem>>, vector<1x64xf32>
    %c2_86 = arith.constant 2 : index
    %c0_87 = arith.constant 0 : index
    %104 = tpu.strided_load %arg23[%c2_86, %c0_87] {strides = array<i32: 2, 1>} : memref<6x64xf32, #tpu.memory_space<vmem>>, vector<1x64xf32>
    %105 = tpu.concatenate %102, %103, %104 in 1 : vector<1x64xf32>, vector<1x64xf32>, vector<1x64xf32> -> vector<1x192xf32>
    %c3 = arith.constant 3 : index
    %c0_88 = arith.constant 0 : index
    %106 = tpu.strided_load %arg23[%c3, %c0_88] {strides = array<i32: 2, 1>} : memref<6x64xf32, #tpu.memory_space<vmem>>, vector<1x64xf32>
    %c4_89 = arith.constant 4 : index
    %c0_90 = arith.constant 0 : index
    %107 = tpu.strided_load %arg23[%c4_89, %c0_90] {strides = array<i32: 2, 1>} : memref<6x64xf32, #tpu.memory_space<vmem>>, vector<1x64xf32>
    %c5_91 = arith.constant 5 : index
    %c0_92 = arith.constant 0 : index
    %108 = tpu.strided_load %arg23[%c5_91, %c0_92] {strides = array<i32: 2, 1>} : memref<6x64xf32, #tpu.memory_space<vmem>>, vector<1x64xf32>
    %109 = tpu.concatenate %106, %107, %108 in 1 : vector<1x64xf32>, vector<1x64xf32>, vector<1x64xf32> -> vector<1x192xf32>
    %110 = tpu.concatenate %105, %109 in 0 : vector<1x192xf32>, vector<1x192xf32> -> vector<2x192xf32>
    %c0_93 = arith.constant 0 : index
    %c0_94 = arith.constant 0 : index
    %111 = vector.load %arg11[%c0_93, %c0_94] : memref<192x64xf32, #tpu.memory_space<vmem>>, vector<192x64xf32>
    %cst_95 = arith.constant dense<0.000000e+00> : vector<2x64xf32>
    %112 = tpu.matmul %110, %111, %cst_95 {dimension_numbers = #tpu.dot_dimension_numbers<[1], [0], [0], [1], [0, 0, 1, 1], [], []>} : vector<2x192xf32>, vector<192x64xf32>, vector<2x64xf32> -> vector<2x64xf32>
    %c0_96 = arith.constant 0 : index
    %c0_97 = arith.constant 0 : index
    %113 = vector.load %arg12[%c0_96, %c0_97] : memref<1x64xf32, #tpu.memory_space<vmem>>, vector<1x64xf32>
    %114 = vector.broadcast %113 : vector<1x64xf32> to vector<2x64xf32>
    %115 = arith.addf %112, %114 : vector<2x64xf32>
    %cst_98 = arith.constant 0.000000e+00 : f32
    %116 = vector.broadcast %cst_98 : f32 to vector<2x64xf32>
    %117 = arith.maximumf %115, %116 : vector<2x64xf32>
    %118 = tpu.concatenate %117, %11 in 1 : vector<2x64xf32>, vector<2x4xf32> -> vector<2x68xf32>
    %c0_99 = arith.constant 0 : index
    %c0_100 = arith.constant 0 : index
    %119 = vector.load %arg13[%c0_99, %c0_100] : memref<68x128xf32, #tpu.memory_space<vmem>>, vector<68x128xf32>
    %cst_101 = arith.constant dense<0.000000e+00> : vector<2x128xf32>
    %120 = tpu.matmul %118, %119, %cst_101 {dimension_numbers = #tpu.dot_dimension_numbers<[1], [0], [0], [1], [0, 0, 1, 1], [], []>} : vector<2x68xf32>, vector<68x128xf32>, vector<2x128xf32> -> vector<2x128xf32>
    %c0_102 = arith.constant 0 : index
    %c0_103 = arith.constant 0 : index
    %121 = vector.load %arg14[%c0_102, %c0_103] : memref<1x128xf32, #tpu.memory_space<vmem>>, vector<1x128xf32>
    %122 = vector.broadcast %121 : vector<1x128xf32> to vector<2x128xf32>
    %123 = arith.addf %120, %122 : vector<2x128xf32>
    %124 = math.tanh %123 : vector<2x128xf32>
    %c0_104 = arith.constant 0 : index
    %c0_105 = arith.constant 0 : index
    %125 = vector.load %arg15[%c0_104, %c0_105] : memref<128x16xf32, #tpu.memory_space<vmem>>, vector<128x16xf32>
    %cst_106 = arith.constant dense<0.000000e+00> : vector<2x16xf32>
    %126 = tpu.matmul %124, %125, %cst_106 {dimension_numbers = #tpu.dot_dimension_numbers<[1], [0], [0], [1], [0, 0, 1, 1], [], []>} : vector<2x128xf32>, vector<128x16xf32>, vector<2x16xf32> -> vector<2x16xf32>
    %c0_107 = arith.constant 0 : index
    %c0_108 = arith.constant 0 : index
    %127 = vector.load %arg16[%c0_107, %c0_108] : memref<1x16xf32, #tpu.memory_space<vmem>>, vector<1x16xf32>
    %128 = vector.broadcast %127 : vector<1x16xf32> to vector<2x16xf32>
    %129 = arith.addf %126, %128 : vector<2x16xf32>
    %c0_109 = arith.constant 0 : index
    %c0_110 = arith.constant 0 : index
    %130 = vector.load %arg17[%c0_109, %c0_110] : memref<16x128xf32, #tpu.memory_space<vmem>>, vector<16x128xf32>
    %cst_111 = arith.constant dense<0.000000e+00> : vector<2x128xf32>
    %131 = tpu.matmul %129, %130, %cst_111 {dimension_numbers = #tpu.dot_dimension_numbers<[1], [0], [0], [1], [0, 0, 1, 1], [], []>} : vector<2x16xf32>, vector<16x128xf32>, vector<2x128xf32> -> vector<2x128xf32>
    %c0_112 = arith.constant 0 : index
    %c0_113 = arith.constant 0 : index
    %132 = vector.load %arg18[%c0_112, %c0_113] : memref<1x128xf32, #tpu.memory_space<vmem>>, vector<1x128xf32>
    %133 = vector.broadcast %132 : vector<1x128xf32> to vector<2x128xf32>
    %134 = arith.addf %131, %133 : vector<2x128xf32>
    %c0_114 = arith.constant 0 : index
    %c0_115 = arith.constant 0 : index
    %135 = vector.load %arg19[%c0_114, %c0_115] : memref<2x128xf32, #tpu.memory_space<vmem>>, vector<2x128xf32>
    tpu.vector_store %arg19[%c0_114, %c0_115], %134 {strides = array<i32>} : memref<2x128xf32, #tpu.memory_space<vmem>>, vector<2x128xf32>,
    return
  }
  func.func @transform_0(%arg0: i32, %arg1: memref<2xi32, #tpu.memory_space<smem>>) -> (i32, i32) {
    %c0_i32 = arith.constant 0 : i32
    %c0_i32_0 = arith.constant 0 : i32
    %c0_i32_1 = arith.constant 0 : i32
    return %c0_i32, %c0_i32_0 : i32, i32
  }
  func.func @transform_1(%arg0: i32, %arg1: memref<2xi32, #tpu.memory_space<smem>>) -> (i32, i32) {
    %c0_i32 = arith.constant 0 : i32
    %c0_i32_0 = arith.constant 0 : i32
    %c0_i32_1 = arith.constant 0 : i32
    return %c0_i32, %c0_i32_0 : i32, i32
  }
  func.func @transform_2(%arg0: i32, %arg1: memref<2xi32, #tpu.memory_space<smem>>) -> (i32, i32, i32) {
    %c0_i32 = arith.constant 0 : i32
    %c0_i32_0 = arith.constant 0 : i32
    %c0_i32_1 = arith.constant 0 : i32
    %c0_i32_2 = arith.constant 0 : i32
    return %c0_i32, %c0_i32_0, %c0_i32_1 : i32, i32, i32
  }
  func.func @transform_3(%arg0: i32, %arg1: memref<2xi32, #tpu.memory_space<smem>>) -> (i32, i32) {
    %c0_i32 = arith.constant 0 : i32
    %c0_i32_0 = arith.constant 0 : i32
    %c0_i32_1 = arith.constant 0 : i32
    return %c0_i32, %c0_i32_0 : i32, i32
  }
  func.func @transform_4(%arg0: i32, %arg1: memref<2xi32, #tpu.memory_space<smem>>) -> (i32, i32) {
    %c0_i32 = arith.constant 0 : i32
    %c0_i32_0 = arith.constant 0 : i32
    %c0_i32_1 = arith.constant 0 : i32
    return %c0_i32, %c0_i32_0 : i32, i32
  }
  func.func @transform_5(%arg0: i32, %arg1: memref<2xi32, #tpu.memory_space<smem>>) -> (i32, i32) {
    %c0_i32 = arith.constant 0 : i32
    %c0_i32_0 = arith.constant 0 : i32
    %c0_i32_1 = arith.constant 0 : i32
    return %c0_i32, %c0_i32_0 : i32, i32
  }
  func.func @transform_6(%arg0: i32, %arg1: memref<2xi32, #tpu.memory_space<smem>>) -> (i32, i32) {
    %c0_i32 = arith.constant 0 : i32
    %c0_i32_0 = arith.constant 0 : i32
    %c0_i32_1 = arith.constant 0 : i32
    return %c0_i32, %c0_i32_0 : i32, i32
  }
  func.func @transform_7(%arg0: i32, %arg1: memref<2xi32, #tpu.memory_space<smem>>) -> (i32, i32) {
    %c0_i32 = arith.constant 0 : i32
    %c0_i32_0 = arith.constant 0 : i32
    %c0_i32_1 = arith.constant 0 : i32
    return %c0_i32, %c0_i32_0 : i32, i32
  }
  func.func @transform_8(%arg0: i32, %arg1: memref<2xi32, #tpu.memory_space<smem>>) -> (i32, i32) {
    %c0_i32 = arith.constant 0 : i32
    %c0_i32_0 = arith.constant 0 : i32
    %c0_i32_1 = arith.constant 0 : i32
    return %c0_i32, %c0_i32_0 : i32, i32
  }
  func.func @transform_9(%arg0: i32, %arg1: memref<2xi32, #tpu.memory_space<smem>>) -> (i32, i32) {
    %c0_i32 = arith.constant 0 : i32
    %c0_i32_0 = arith.constant 0 : i32
    %c0_i32_1 = arith.constant 0 : i32
    return %c0_i32, %c0_i32_0 : i32, i32
  }
  func.func @transform_10(%arg0: i32, %arg1: memref<2xi32, #tpu.memory_space<smem>>) -> (i32, i32) {
    %c0_i32 = arith.constant 0 : i32
    %c0_i32_0 = arith.constant 0 : i32
    %c0_i32_1 = arith.constant 0 : i32
    return %c0_i32, %c0_i32_0 : i32, i32
  }
  func.func @transform_11(%arg0: i32, %arg1: memref<2xi32, #tpu.memory_space<smem>>) -> (i32, i32) {
    %c0_i32 = arith.constant 0 : i32
    %c0_i32_0 = arith.constant 0 : i32
    %c0_i32_1 = arith.constant 0 : i32
    return %c0_i32, %c0_i32_0 : i32, i32
  }
  func.func @transform_12(%arg0: i32, %arg1: memref<2xi32, #tpu.memory_space<smem>>) -> (i32, i32) {
    %c0_i32 = arith.constant 0 : i32
    %c0_i32_0 = arith.constant 0 : i32
    %c0_i32_1 = arith.constant 0 : i32
    return %c0_i32, %c0_i32_0 : i32, i32
  }
  func.func @transform_13(%arg0: i32, %arg1: memref<2xi32, #tpu.memory_space<smem>>) -> (i32, i32) {
    %c0_i32 = arith.constant 0 : i32
    %c0_i32_0 = arith.constant 0 : i32
    %c0_i32_1 = arith.constant 0 : i32
    return %c0_i32, %c0_i32_0 : i32, i32
  }
  func.func @transform_14(%arg0: i32, %arg1: memref<2xi32, #tpu.memory_space<smem>>) -> (i32, i32) {
    %c0_i32 = arith.constant 0 : i32
    %c0_i32_0 = arith.constant 0 : i32
    %c0_i32_1 = arith.constant 0 : i32
    return %c0_i32, %c0_i32_0 : i32, i32
  }
  func.func @transform_15(%arg0: i32, %arg1: memref<2xi32, #tpu.memory_space<smem>>) -> (i32, i32) {
    %c0_i32 = arith.constant 0 : i32
    %c0_i32_0 = arith.constant 0 : i32
    return %c0_i32, %arg0 : i32, i32
  }
  func.func @transform_16(%arg0: i32, %arg1: memref<2xi32, #tpu.memory_space<smem>>) -> (i32, i32) {
    %c0_i32 = arith.constant 0 : i32
    %c0_i32_0 = arith.constant 0 : i32
    return %c0_i32, %arg0 : i32, i32
  }
  func.func @transform_17(%arg0: i32, %arg1: memref<2xi32, #tpu.memory_space<smem>>) -> (i32, i32) {
    %c0_i32 = arith.constant 0 : i32
    %c0_i32_0 = arith.constant 0 : i32
    return %c0_i32, %arg0 : i32, i32
  }
}

</mosaic_0001>

<bundles_post_ra>
// kernel: voca_forward.1
= control target key start
LH: loop header
LB: loop body
LE: loop exit
PB: predicated region body
PF: predicated region fallthrough
CT: control target
= control target key end

     0   :  { %s1721_s0 = inlined_call_operand.vmem [shape: s32[2], index: 0, kind: input, shape index: {}]   ;;  %s1722_s3 = inlined_call_operand.vmem [shape: f32[2,8,12], index: 3, kind: input, shape index: {}]   ;;  %s1723_s4 = inlined_call_operand.vmem [shape: f32[48,32], index: 4, kind: input, shape index: {}]   ;;  %s1724_s5 = inlined_call_operand.vmem [shape: f32[1,32], index: 5, kind: input, shape index: {}]   ;;  %s1725_s6 = inlined_call_operand.vmem [shape: f32[96,32], index: 6, kind: input, shape index: {}]   ;;  %s1726_s7 = inlined_call_operand.vmem [shape: f32[1,32], index: 7, kind: input, shape index: {}]   ;;  %s1727_s8 = inlined_call_operand.vmem [shape: f32[96,64], index: 8, kind: input, shape index: {}]   ;;  %s1728_s9 = inlined_call_operand.vmem [shape: f32[1,64], index: 9, kind: input, shape index: {}]   ;;  %s1729_s10 = inlined_call_operand.vmem [shape: f32[192,64], index: 10, kind: input, shape index: {}]   ;;  %s1730_s11 = inlined_call_operand.vmem [shape: f32[1,64], index: 11, kind: input, shape index: {}]   ;;  %s1731_s12 = inlined_call_operand.vmem [shape: f32[68,128], index: 12, kind: input, shape index: {}]   ;;  %s1732_s13 = inlined_call_operand.vmem [shape: f32[1,128], index: 13, kind: input, shape index: {}]   ;;  %s1733_s14 = inlined_call_operand.vmem [shape: f32[128,16], index: 14, kind: input, shape index: {}]   ;;  %s1734_s15 = inlined_call_operand.vmem [shape: f32[1,16], index: 15, kind: input, shape index: {}]   ;;  %s1735_s16 = inlined_call_operand.vmem [shape: f32[16,128], index: 16, kind: input, shape index: {}]   ;;  %s1736_s17 = inlined_call_operand.vmem [shape: f32[1,128], index: 17, kind: input, shape index: {}]   ;;  %s1737_s18 = inlined_call_operand.vmem [shape: f32[2,128], index: 18, kind: output, shape index: {}]   ;;  %s1738_s1 = inlined_call_operand.<no memory space> [shape: f32[1,1], index: 1, kind: input, shape index: {}]   ;;  %s1739_s2 = inlined_call_operand.<no memory space> [shape: f32[1,1], index: 2, kind: input, shape index: {}]  }
   0x1   :  { %1742 = sst [smem:[#allocation11_spill]] %s1721_s0  ;;  %v27_v0 = vstv %s1738_s1  ;;  %v29_v1 = vstv %s1739_s2 }
   0x2   :  { %1743 = sst [smem:[#allocation12_spill]] %s1722_s3  ;;  %28 = vst [vmem:[#allocation8] sm:$0x1] %v27_v0  ;;  %30 = vst [vmem:[#allocation9] sm:$0x1] %v29_v1 }
   0x3   :  { %1744 = sst [smem:[#allocation13_spill]] %s1723_s4 }
   0x4   :  { %1745 = sst [smem:[#allocation14_spill]] %s1732_s13 }
   0x5   :  { %s1746_s29 = sld [smem:[#allocation11_spill]] }
   0xb   :  { %s23_s13 = sshll.u32 %s1746_s29, 4  ;;  %s24_s13 = int_to_ptr.vmem [resolvable:$true] %s23_s13 }
   0xc   :  { %s1166_s20 = scalar_lea.vmem %s24_s13, 16  ;;  %p1171_p1 = scmp.lt.s32.totalorder %s24_s13, %s24_s13 }
   0xd   :  { %p1167_p0 = scmp.ne.s32.totalorder %s24_s13, %s1166_s20  ;;  %p1172_p2 = scmp.lt.s32.totalorder %s1166_s20, %s1166_s20 }
   0xf   :  { %p1173_p3 = por %p1172_p2, %p1171_p1 }
  0x11   :  { %p1174_p4 = pnand %p1173_p3, %p1167_p0 }
  0x13   :  { %1177 = shalt.err (!%p1174_p4)  }
  0x14   :  { %s1180_s21 = smov [#allocation7]  }
  0x15   :  { %26 = dma.vmem_to_smem %s24_s13, 16, %s1180_s21, [#allocation6] }
  0x16   :  { %1178 = dma.done.wait [#allocation6], 16 }
  0x17   :  { %1179 = vsyncadd [#allocation6], 4294967280 }
  0x18   :  { %32 = sfence }
  0x19   :  { %v943_v2 = vld [vmem:[#allocation8] ss:$0 sm:$0xff]  ;;  %v67_v3 = vlaneseq  ;;  %v1181_v4 = vmov 0   ;;  %s941_s1 = sld [smem:[#allocation7 + $0x1]]  ;;  %v1182_v5 = vmov 0.0   ;;  %vm81_vm0 = vcmask 130048  }
  0x1a   :  { %1163 = vset.pattern.permute.xlu0 %v1181_v4  ;;  %1023 = vmatprep.subr.mxu0 %v1182_v5  ;;  %s69_s2 = sld [smem:[#allocation7]]  ;;  %vm84_vm1 = vcmask 125952   ;;  %v944_v6 = vld [vmem:[#allocation9] ss:$0 sm:$0xff]  ;;  %82 = vst.msk [vmem:[#allocation2] sm:$0xff] %vm81_vm0, %v1182_v5  ;;  %83 = vst.msk [vmem:[#allocation2 + $0x8] sm:$0xff] %vm81_vm0, %v1182_v5 }
  0x1b   :  { %95 = vperm.xlu0 %1163, %v943_v2   ;;  %1038 = vmatprep.subr.mxu1 %v1182_v5  ;;  %85 = vst.msk [vmem:[#allocation2 + $0x10] sm:$0xf] %vm84_vm1, %v1182_v5  ;;  %v68_v7 = vand.u32 127, %v67_v3  ;;  %s1183_s13 = smov 12   ;;  %s1747_s23 = sld [smem:[#allocation13_spill]]  ;;  %vm140_vm4 = vcmask 261120  }
  0x1c   :  { %s1748_s28 = sld [smem:[#allocation12_spill]]  ;;  %vm113_vm5 = vcmask 97280   ;;  %251 = vst.msk [vmem:[#allocation3] sm:$0xff] %vm140_vm4, %v1182_v5  ;;  %388 = vst.msk [vmem:[#allocation4] sm:$0xff] %vm140_vm4, %v1182_v5  ;;  %vm1184_vm6 = vmmov 0   ;;  %s1185_s22 = smov 16  }
  0x1d   :  { %1035 = vmatprep.mubr.msk.f32.mxu0 %vm1184_vm6, %v1182_v5  ;;  %1062 = vmatprep.mubr.msk.f32.mxu1 %vm1184_vm6, %v1182_v5  ;;  %s1186_s4 = smov 32   ;;  %vm161_vm7 = vcmask 1043456   ;;  %vm176_vm8 = vcmask 392192   ;;  %vm252_vm9 = vcmask 257024   ;;  %v305_v46 = vld [vmem:[%s1725_s6 + $0x58] sm:$0xff]  ;;  %v304_v47 = vld [vmem:[%s1725_s6 + $0x50] sm:$0xff] }
  0x1e   :  { %253 = vst.msk [vmem:[#allocation3 + $0x8] sm:$0xf] %vm252_vm9, %v1182_v5  ;;  %1039 = vmatpush3.msra.mxu1 %v305_v46  ;;  %v303_v48 = vld [vmem:[%s1725_s6 + $0x48] sm:$0xff]  ;;  %v302_v49 = vld [vmem:[%s1725_s6 + $0x40] sm:$0xff]  ;;  %v301_v50 = vld [vmem:[%s1725_s6 + $0x38] sm:$0xff]  ;;  %vm255_vm10 = vcmask 261124  }
  0x1f   :  { %105 = vperm.xlu0 %1163, %v944_v6   ;;  %v75_v8 = vstv %s941_s1  ;;  %1040 = vmatprep.subr.mxu1 %v1182_v5  ;;  %v300_v51 = vld [vmem:[%s1725_s6 + $0x30] sm:$0xff]  ;;  %v299_v52 = vld [vmem:[%s1725_s6 + $0x28] sm:$0xff]  ;;  %v298_v53 = vld [vmem:[%s1725_s6 + $0x20] sm:$0xff]  ;;  %s1187_s0 = smov 64   ;;  %vm271_vm11 = vcmask 523264   ;;  %vm292_vm12 = vcmask 1041408  }
  0x20   :  { %vm76_vm2 = vcmp.eq.s32.totalorder %v68_v7, %v75_v8  ;;  %v70_v9 = vstv %s69_s2  ;;  %1041 = vmatpush3.msra.mxu1 %v304_v47  ;;  %v946_v54 = vld [vmem:[%s1724_s5] ss:$0 sm:$0xff]  ;;  %v297_v57 = vld [vmem:[%s1725_s6 + $0x18] sm:$0xff]  ;;  %v296_v59 = vld [vmem:[%s1725_s6 + $0x10] sm:$0xff]  ;;  %vm313_vm13 = vcmask 785408   ;;  %vm389_vm14 = vcmask 254976  }
  0x21   :  { %v1300_v10 = vsel %vm76_vm2, 1.0, %v1182_v5  ;;  %vm71_vm3 = vcmp.eq.s32.totalorder %v68_v7, %v70_v9  ;;  %v168_v12 = vld [vmem:[%s1747_s23 + $0x28] sm:$0xff]  ;;  %v167_v13 = vld [vmem:[%s1747_s23 + $0x20] sm:$0xff]  ;;  %v166_v22 = vld [vmem:[%s1747_s23 + $0x18] sm:$0xff]  ;;  %1042 = vmatprep.subr.mxu1 %v1182_v5  ;;  %vm391_vm15 = vcmask 257026   ;;  %vm79_vm1 = vcmask 1040384  }
  0x22   :  { %121 = vrot.lane.b32.xlu1 %v1300_v10, %s1183_s13  ;;  %v1304_v11 = vsel %vm71_vm3, 1.0, %v1182_v5  ;;  %1024 = vmatpush3.msra.mxu0 %v168_v12  ;;  %v88_v15 = vld [vmem:[%s1748_s28] sm:$0xff]  ;;  %v945_v16 = vld [vmem:[%s1748_s28 + $0x8] sm:$0xff]  ;;  %v165_v25 = vld [vmem:[%s1747_s23 + $0x10] sm:$0xff]  ;;  %vm521_vm2 = vcmask 521216   ;;  %vm523_vm3 = vcmask 516096  }
  0x23   :  { %1025 = vmatprep.subr.mxu0 %v1182_v5  ;;  %v164_v28 = vld [vmem:[%s1747_s23 + $0x8] sm:$0xff]  ;;  %v163_v29 = vld [vmem:[%s1747_s23] sm:$0xff]  ;;  %1043 = vmatpush3.msra.mxu1 %v303_v48  ;;  %522 = vst.msk [vmem:[#allocation5] sm:$0x3f] %vm521_vm2, %v1182_v5 }
  0x24   :  { %1026 = vmatpush3.msra.mxu0 %v167_v13  ;;  %1044 = vmatprep.subr.mxu1 %v1182_v5  ;;  %v295_v61 = vld [vmem:[%s1725_s6 + $0x8] sm:$0xff]  ;;  %v294_v62 = vld [vmem:[%s1725_s6] sm:$0xff] }
  0x25   :  { %1027 = vmatprep.subr.mxu0 %v1182_v5  ;;  %1045 = vmatpush3.msra.mxu1 %v302_v49 }
  0x26   :  { %110 = vrot.lane.b32.xlu1 %v1304_v11, %s1183_s13  ;;  %1028 = vmatpush3.msra.mxu0 %v166_v22  ;;  %v435_v22 = vld [vmem:[%s1727_s8 + $0x38] sm:$0xff] }
  0x27   :  { %1029 = vmatprep.subr.mxu0 %v1182_v5  ;;  %1046 = vmatprep.subr.mxu1 %v1182_v5 }
  0x28   :  { %1030 = vmatpush3.msra.mxu0 %v165_v25  ;;  %1047 = vmatpush3.msra.mxu1 %v301_v50  ;;  %v432_v25 = vld [vmem:[%s1727_s8 + $0x20] sm:$0xff] }
  0x29   :  { %1031 = vmatprep.subr.mxu0 %v1182_v5  ;;  %1048 = vmatprep.subr.mxu1 %v1182_v5 }
  0x2a   :  { %1032 = vmatpush3.msra.mxu0 %v164_v28  ;;  %1049 = vmatpush3.msra.mxu1 %v300_v51  ;;  %v571_v51 = vld [vmem:[%s1729_s10 + $0x78] sm:$0xff] }
  0x2b   :  { %1033 = vmatprep.subr.mxu0 %v1182_v5  ;;  %1050 = vmatprep.subr.mxu1 %v1182_v5 }
  0x2c   :  { %1034 = vmatpush3.msra.mxu0 %v163_v29  ;;  %1051 = vmatpush3.msra.mxu1 %v299_v52  ;;  %v431_v29 = vld [vmem:[%s1727_s8 + $0x18] sm:$0xff]  ;;  %v570_v52 = vld [vmem:[%s1729_s10 + $0x70] sm:$0xff] }
  0x2d   :  { %1065 = vmatprep.subr.mxu0 %v1182_v5  ;;  %1052 = vmatprep.subr.mxu1 %v1182_v5 }
  0x2e   :  { %1053 = vmatpush3.msra.mxu1 %v298_v53  ;;  %v569_v53 = vld [vmem:[%s1729_s10 + $0x68] sm:$0xff] }
  0x2f   :  { %1054 = vmatprep.subr.mxu1 %v1182_v5 }
  0x30   :  { %1055 = vmatpush3.msra.mxu1 %v297_v57  ;;  %v565_v57 = vld [vmem:[%s1729_s10 + $0x48] sm:$0xff] }
  0x31   :  { %1056 = vmatprep.subr.mxu1 %v1182_v5 }
  0x32   :  { %1057 = vmatpush3.msra.mxu1 %v296_v59  ;;  %v563_v59 = vld [vmem:[%s1729_s10 + $0x38] sm:$0xff] }
  0x33   :  { %1058 = vmatprep.subr.mxu1 %v1182_v5 }
  0x34   :  { %1059 = vmatpush3.msra.mxu1 %v295_v61  ;;  %v561_v61 = vld [vmem:[%s1729_s10 + $0x28] sm:$0xff] }
  0x35   :  { %1060 = vmatprep.subr.mxu1 %v1182_v5 }
  0x36   :  { %1061 = vmatpush3.msra.mxu1 %v294_v62  ;;  %v560_v62 = vld [vmem:[%s1729_s10 + $0x20] sm:$0xff] }
  0x37   :  { %590 = vmatprep.subr.mxu1 %v1182_v5 }
  0x94   :  { %v122_v14 = vpop.permute.xlu1 %121 }
  0x96   :  { %v96_v17 = vpop.permute.xlu0 %95 }
  0x97   :  { %v98_v18 = vmul.f32 %v96_v17, %v88_v15  ;;  %v118_v19 = vmul.f32 %v945_v16, %v96_v17 }
  0x98   :  { %v111_v21 = vpop.permute.xlu1 %110 }
  0x9a   :  { %v106_v20 = vpop.permute.xlu0 %105 }
  0x9b   :  { %v108_v23 = vadd.f32 %v106_v20, %v98_v18  ;;  %v119_v24 = vadd.f32 %v118_v19, %v106_v20  ;;  %v439_v18 = vld [vmem:[%s1727_s8 + $0x58] sm:$0xff]  ;;  %v438_v19 = vld [vmem:[%s1727_s8 + $0x50] sm:$0xff]  ;;  %v437_v20 = vld [vmem:[%s1727_s8 + $0x48] sm:$0xff] }
  0x9d   :  { %v124_v26 = vsel %vm113_vm5, %v119_v24, %v122_v14  ;;  %v114_v27 = vsel %vm113_vm5, %v108_v23, %v111_v21  ;;  %v436_v21 = vld [vmem:[%s1727_s8 + $0x40] sm:$0xff]  ;;  %v434_v23 = vld [vmem:[%s1727_s8 + $0x30] sm:$0xff]  ;;  %v433_v24 = vld [vmem:[%s1727_s8 + $0x28] sm:$0xff]  ;;  %vm682_vm5 = vcmask 556032  }
  0x9e   :  { %125 = vst.msk [vmem:[#allocation2 + $0xb] sm:$0xff] %vm81_vm0, %v124_v26  ;;  %115 = vst.msk [vmem:[#allocation2 + $0x1] sm:$0xff] %vm81_vm0, %v114_v27  ;;  %v948_v26 = vld [vmem:[%s1726_s7] ss:$0 sm:$0xff] }
  0xa5   :  { %v145_v30 = vld [vmem:[#allocation2 + $0xb] ss:$2 sm:$0xf]  ;;  %v147_v31 = vld [vmem:[#allocation2 + $0xc] ss:$2 sm:$0xf] }
  0xa6   :  { %149 = vrot.lane.b32.xlu0 %v145_v30, %s1185_s22  ;;  %153 = vrot.lane.b32.xlu1 %v147_v31, %s1186_s4  ;;  %v130_v32 = vld [vmem:[#allocation2 + $0x2] ss:$2 sm:$0xf]  ;;  %v128_v33 = vld [vmem:[#allocation2 + $0x1] ss:$2 sm:$0xf] }
  0xa7   :  { %v143_v35 = vld [vmem:[#allocation2 + $0xa] ss:$2 sm:$0xf]  ;;  %v126_v40 = vld [vmem:[#allocation2] ss:$2 sm:$0xf] }
  0xa8   :  { %v430_v31 = vld [vmem:[%s1727_s8 + $0x10] sm:$0xff] }
  0xaa   :  { %136 = vrot.lane.b32.xlu1 %v130_v32, %s1186_s4  ;;  %132 = vrot.lane.b32.xlu0 %v128_v33, %s1185_s22  ;;  %v429_v33 = vld [vmem:[%s1727_s8 + $0x8] sm:$0xff] }
 0x118   :  { %v150_v34 = vpop.permute.xlu0 %149  ;;  %v154_v36 = vpop.permute.xlu1 %153 }
 0x119   :  { %v156_v37 = vsel %vm81_vm0, %v143_v35, %v150_v34  ;;  %v428_v34 = vld [vmem:[%s1727_s8] sm:$0xff] }
 0x11a   :  { %v157_v38 = vsel %vm140_vm4, %v156_v37, %v154_v36 }
 0x11b   :  { %v159_v42 = vrot.slane %v157_v38, 4 }
 0x11c   :  { %v133_v39 = vpop.permute.xlu0 %132  ;;  %v137_v41 = vpop.permute.xlu1 %136 }
 0x11d   :  { %v139_v43 = vsel %vm81_vm0, %v126_v40, %v133_v39  ;;  %v409_v39 = vld [vmem:[#allocation4 + $0x4] ss:$2 sm:$0x1] }
 0x11e   :  { %v141_v44 = vsel %vm140_vm4, %v139_v43, %v137_v41 }
 0x11f   :  { %v162_v45 = vsel %vm161_vm7, %v141_v44, %v159_v42  ;;  %v393_v44 = vld [vmem:[#allocation4] ss:$2 sm:$0x1] }
 0x120   :  { %1036 = vmatmul.mubr.msk.f32.vlgmr.msra.gmra.mxu0 %vm176_vm8, %v162_v45 }
 0x121   :  { %1089 = vmatprep.mubr.msk.f32.mxu0 %vm1184_vm6, %v1182_v5  ;;  %1066 = vmatpush3.msra.mxu0 %v439_v18  ;;  %v531_v18 = vld [vmem:[#allocation5 + $0x2] ss:$2 sm:$0x1] }
 0x122   :  { %1067 = vmatprep.subr.mxu0 %v1182_v5 }
 0x123   :  { %1068 = vmatpush3.msra.mxu0 %v438_v19  ;;  %v542_v19 = vld [vmem:[#allocation5 + $0x5] ss:$2 sm:$0x1] }
 0x124   :  { %1069 = vmatprep.subr.mxu0 %v1182_v5 }
 0x125   :  { %1070 = vmatpush3.msra.mxu0 %v437_v20 }
 0x126   :  { %1071 = vmatprep.subr.mxu0 %v1182_v5 }
 0x127   :  { %1072 = vmatpush3.msra.mxu0 %v436_v21  ;;  %v551_v21 = vrot.slane %v542_v19, 7 }
 0x128   :  { %1073 = vmatprep.subr.mxu0 %v1182_v5 }
 0x129   :  { %1074 = vmatpush3.msra.mxu0 %v435_v22  ;;  %v674_v22 = vld [vmem:[%s1731_s12 + $0x40] sm:$0xf] }
 0x12a   :  { %1075 = vmatprep.subr.mxu0 %v1182_v5 }
 0x12b   :  { %1076 = vmatpush3.msra.mxu0 %v434_v23  ;;  %v673_v23 = vld [vmem:[%s1731_s12 + $0x38] sm:$0xff] }
 0x12c   :  { %1077 = vmatprep.subr.mxu0 %v1182_v5 }
 0x12d   :  { %1078 = vmatpush3.msra.mxu0 %v433_v24  ;;  %v555_v24 = vsel %vm79_vm1, %v531_v18, %v551_v21 }
 0x12e   :  { %1079 = vmatprep.subr.mxu0 %v1182_v5 }
 0x12f   :  { %1080 = vmatpush3.msra.mxu0 %v432_v25  ;;  %v672_v25 = vld [vmem:[%s1731_s12 + $0x30] sm:$0xff] }
 0x130   :  { %1081 = vmatprep.subr.mxu0 %v1182_v5 }
 0x131   :  { %1082 = vmatpush3.msra.mxu0 %v431_v29 }
 0x132   :  { %1083 = vmatprep.subr.mxu0 %v1182_v5 }
 0x133   :  { %1084 = vmatpush3.msra.mxu0 %v430_v31  ;;  %v80_v31 = vsel %vm79_vm1, %v1304_v11, %v1300_v10  ;;  %v668_v10 = vld [vmem:[%s1731_s12 + $0x10] sm:$0xff]  ;;  %v667_v11 = vld [vmem:[%s1731_s12 + $0x8] sm:$0xff] }
 0x134   :  { %1085 = vmatprep.subr.mxu0 %v1182_v5 }
 0x135   :  { %1086 = vmatpush3.msra.mxu0 %v429_v33 }
 0x136   :  { %1087 = vmatprep.subr.mxu0 %v1182_v5 }
 0x137   :  { %1088 = vmatpush3.msra.mxu0 %v428_v34  ;;  %v527_v34 = vld [vmem:[#allocation5] ss:$2 sm:$0x1] }
 0x138   :  { %1092 = vmatprep.subr.mxu0 %v1182_v5 }
 0x1e0   :  { %v246_v55 = vpop.f32.mrf.mxu0 }
 0x1e1   :  { %v247_v56 = vadd.f32 %v946_v54, %v246_v55  ;;  %v568_v54 = vld [vmem:[%s1729_s10 + $0x60] sm:$0xff]  ;;  %v567_v55 = vld [vmem:[%s1729_s10 + $0x58] sm:$0xff] }
 0x1e2   :  { %v1037_v58 = vpop.f32.mrf.mxu0 }
 0x1e3   :  { %v250_v60 = vmax.f32 %v247_v56, 0.0  ;;  %v566_v56 = vld [vmem:[%s1729_s10 + $0x50] sm:$0xff]  ;;  %v564_v58 = vld [vmem:[%s1729_s10 + $0x40] sm:$0xff] }
 0x1e5   :  { %254 = vst.msk [vmem:[#allocation3 + $0x1] sm:$0xf] %vm252_vm9, %v250_v60 }
 0x1e6   :  { %256 = vst.msk [vmem:[#allocation3 + $0x3] sm:$0xf0] %vm255_vm10, %v250_v60  ;;  %v562_v60 = vld [vmem:[%s1729_s10 + $0x30] sm:$0xff] }
 0x1ec   :  { %v261_v1 = vld [vmem:[#allocation3 + $0x2] ss:$2 sm:$0x3]  ;;  %v259_v2 = vld [vmem:[#allocation3 + $0x1] ss:$2 sm:$0x3] }
 0x1ed   :  { %v278_v63 = vld [vmem:[#allocation3 + $0x8] ss:$2 sm:$0x3]  ;;  %v276_v0 = vld [vmem:[#allocation3 + $0x7] ss:$2 sm:$0x3] }
 0x1ee   :  { %284 = vrot.lane.b32.xlu1 %v278_v63, %s1187_s0  ;;  %280 = vrot.lane.b32.xlu0 %v276_v0, %s1186_s4  ;;  %v274_v6 = vld [vmem:[#allocation3 + $0x6] ss:$2 sm:$0x3]  ;;  %v257_v13 = vld [vmem:[#allocation3] ss:$2 sm:$0x3] }
 0x1ef   :  { %v559_v63 = vld [vmem:[%s1729_s10 + $0x18] sm:$0xff]  ;;  %v558_v0 = vld [vmem:[%s1729_s10 + $0x10] sm:$0xff] }
 0x1f2   :  { %267 = vrot.lane.b32.xlu1 %v261_v1, %s1187_s0  ;;  %263 = vrot.lane.b32.xlu0 %v259_v2, %s1186_s4  ;;  %v557_v1 = vld [vmem:[%s1729_s10 + $0x8] sm:$0xff]  ;;  %v556_v2 = vld [vmem:[%s1729_s10] sm:$0xff] }
 0x260   :  { %v285_v3 = vpop.permute.xlu1 %284  ;;  %v281_v4 = vpop.permute.xlu0 %280 }
 0x261   :  { %v287_v7 = vsel %vm140_vm4, %v274_v6, %v281_v4  ;;  %v578_v4 = vld [vmem:[%s1729_s10 + $0xb0] sm:$0xff]  ;;  %v577_v6 = vld [vmem:[%s1729_s10 + $0xa8] sm:$0xff] }
 0x262   :  { %v288_v8 = vsel %vm271_vm11, %v287_v7, %v285_v3  ;;  %v579_v3 = vld [vmem:[%s1729_s10 + $0xb8] sm:$0xff]  ;;  %v576_v7 = vld [vmem:[%s1729_s10 + $0xa0] sm:$0xff] }
 0x263   :  { %v290_v14 = vrot.slane %v288_v8, 6  ;;  %v575_v8 = vld [vmem:[%s1729_s10 + $0x98] sm:$0xff] }
 0x264   :  { %v268_v9 = vpop.permute.xlu1 %267  ;;  %v264_v12 = vpop.permute.xlu0 %263 }
 0x265   :  { %v270_v15 = vsel %vm140_vm4, %v257_v13, %v264_v12  ;;  %v950_v12 = vld [vmem:[%s1728_s9] ss:$0 sm:$0xff] }
 0x266   :  { %v272_v16 = vsel %vm271_vm11, %v270_v15, %v268_v9  ;;  %v574_v9 = vld [vmem:[%s1729_s10 + $0x90] sm:$0xff]  ;;  %v573_v15 = vld [vmem:[%s1729_s10 + $0x88] sm:$0xff] }
 0x267   :  { %v293_v17 = vsel %vm292_vm12, %v272_v16, %v290_v14  ;;  %v572_v16 = vld [vmem:[%s1729_s10 + $0x80] sm:$0xff]  ;;  %s1749_s10 = sld [smem:[#allocation14_spill]] }
 0x268   :  { %1063 = vmatmul.mubr.msk.f32.vlgmr.msra.gmra.mxu1 %vm313_vm13, %v293_v17 }
 0x269   :  { %591 = vmatpush1.msra.mxu1 %v571_v51  ;;  %953 = vmatprep.mubr.msk.f32.mxu1 %vm271_vm11, %v555_v24  ;;  %v772_v51 = vld [vmem:[%s1733_s14 + $0x60] sm:$0xff] }
 0x26a   :  { %592 = vmatprep.subr.mxu1 %v1182_v5 }
 0x26b   :  { %593 = vmatpush1.msra.mxu1 %v570_v52  ;;  %v771_v52 = vld [vmem:[%s1733_s14 + $0x58] sm:$0xff] }
 0x26c   :  { %594 = vmatprep.subr.mxu1 %v1182_v5 }
 0x26d   :  { %595 = vmatpush1.msra.mxu1 %v569_v53  ;;  %v770_v53 = vld [vmem:[%s1733_s14 + $0x50] sm:$0xff] }
 0x26e   :  { %596 = vmatprep.subr.mxu1 %v1182_v5 }
 0x26f   :  { %597 = vmatpush1.msra.mxu1 %v568_v54  ;;  %v769_v54 = vld [vmem:[%s1733_s14 + $0x48] sm:$0xff] }
 0x270   :  { %598 = vmatprep.subr.mxu1 %v1182_v5 }
 0x271   :  { %599 = vmatpush1.msra.mxu1 %v567_v55  ;;  %v768_v55 = vld [vmem:[%s1733_s14 + $0x40] sm:$0xff] }
 0x272   :  { %600 = vmatprep.subr.mxu1 %v1182_v5 }
 0x273   :  { %601 = vmatpush1.msra.mxu1 %v566_v56  ;;  %v767_v56 = vld [vmem:[%s1733_s14 + $0x38] sm:$0xff] }
 0x274   :  { %602 = vmatprep.subr.mxu1 %v1182_v5 }
 0x275   :  { %603 = vmatpush1.msra.mxu1 %v565_v57  ;;  %v766_v57 = vld [vmem:[%s1733_s14 + $0x30] sm:$0xff] }
 0x276   :  { %604 = vmatprep.subr.mxu1 %v1182_v5 }
 0x277   :  { %605 = vmatpush1.msra.mxu1 %v564_v58  ;;  %v765_v58 = vld [vmem:[%s1733_s14 + $0x28] sm:$0xff] }
 0x278   :  { %606 = vmatprep.subr.mxu1 %v1182_v5 }
 0x279   :  { %607 = vmatpush1.msra.mxu1 %v563_v59  ;;  %v764_v59 = vld [vmem:[%s1733_s14 + $0x20] sm:$0xff] }
 0x27a   :  { %608 = vmatprep.subr.mxu1 %v1182_v5 }
 0x27b   :  { %609 = vmatpush1.msra.mxu1 %v562_v60  ;;  %v763_v60 = vld [vmem:[%s1733_s14 + $0x18] sm:$0xff] }
 0x27c   :  { %610 = vmatprep.subr.mxu1 %v1182_v5 }
 0x27d   :  { %611 = vmatpush1.msra.mxu1 %v561_v61  ;;  %v762_v61 = vld [vmem:[%s1733_s14 + $0x10] sm:$0xff] }
 0x27e   :  { %612 = vmatprep.subr.mxu1 %v1182_v5 }
 0x27f   :  { %613 = vmatpush1.msra.mxu1 %v560_v62  ;;  %v761_v62 = vld [vmem:[%s1733_s14 + $0x8] sm:$0xff] }
 0x280   :  { %614 = vmatprep.subr.mxu1 %v1182_v5 }
 0x281   :  { %615 = vmatpush1.msra.mxu1 %v559_v63  ;;  %v760_v63 = vld [vmem:[%s1733_s14] sm:$0xff] }
 0x282   :  { %616 = vmatprep.subr.mxu1 %v1182_v5 }
 0x283   :  { %617 = vmatpush1.msra.mxu1 %v558_v0  ;;  %v854_v0 = vld [vmem:[%s1735_s16 + $0x8] sm:$0xff] }
 0x284   :  { %618 = vmatprep.subr.mxu1 %v1182_v5 }
 0x285   :  { %619 = vmatpush1.msra.mxu1 %v557_v1  ;;  %v954_v1 = vld [vmem:[%s1749_s10] ss:$0 sm:$0xff] }
 0x286   :  { %620 = vmatprep.subr.mxu1 %v1182_v5 }
 0x287   :  { %621 = vmatpush1.msra.mxu1 %v556_v2 }
 0x288   :  { %638 = vmatprep.subr.mxu1 %v1182_v5 }
 0x289   :  { %639 = vmatpush2.msra.mxu1 %v579_v3 }
 0x28a   :  { %640 = vmatprep.subr.mxu1 %v1182_v5 }
 0x28b   :  { %641 = vmatpush2.msra.mxu1 %v578_v4 }
 0x28c   :  { %642 = vmatprep.subr.mxu1 %v1182_v5 }
 0x28d   :  { %643 = vmatpush2.msra.mxu1 %v577_v6 }
 0x28e   :  { %644 = vmatprep.subr.mxu1 %v1182_v5 }
 0x28f   :  { %645 = vmatpush2.msra.mxu1 %v576_v7  ;;  %v853_v7 = vld [vmem:[%s1735_s16] sm:$0xff] }
 0x290   :  { %646 = vmatprep.subr.mxu1 %v1182_v5 }
 0x291   :  { %647 = vmatpush2.msra.mxu1 %v575_v8  ;;  %v957_v8 = vld [vmem:[%s1734_s15] ss:$0 sm:$0xff] }
 0x292   :  { %648 = vmatprep.subr.mxu1 %v1182_v5 }
 0x293   :  { %649 = vmatpush2.msra.mxu1 %v574_v9 }
 0x294   :  { %650 = vmatprep.subr.mxu1 %v1182_v5 }
 0x295   :  { %651 = vmatpush2.msra.mxu1 %v573_v15 }
 0x296   :  { %652 = vmatprep.subr.mxu1 %v1182_v5 }
 0x297   :  { %653 = vmatpush2.msra.mxu1 %v572_v16 }
 0x298   :  { %1148 = vmatprep.subr.mxu1 %v1182_v5 }
 0x328   :  { %v383_v27 = vpop.f32.mrf.mxu1 }
 0x329   :  { %v384_v28 = vadd.f32 %v948_v26, %v383_v27  ;;  %v671_v26 = vld [vmem:[%s1731_s12 + $0x28] sm:$0xff]  ;;  %v670_v27 = vld [vmem:[%s1731_s12 + $0x20] sm:$0xff] }
 0x32a   :  { %v1064_v30 = vpop.f32.mrf.mxu1 }
 0x32b   :  { %v387_v32 = vmax.f32 %v384_v28, 0.0  ;;  %v669_v30 = vld [vmem:[%s1731_s12 + $0x18] sm:$0xff] }
 0x32d   :  { %390 = vst.msk [vmem:[#allocation4 + $0x1] sm:$0x3] %vm389_vm14, %v387_v32 }
 0x32e   :  { %392 = vst.msk [vmem:[#allocation4 + $0x3] sm:$0xc] %vm391_vm15, %v387_v32  ;;  %v538_v32 = vld [vmem:[#allocation5 + $0x3] ss:$2 sm:$0x1] }
 0x334   :  { %v397_v37 = vld [vmem:[#allocation4 + $0x2] ss:$2 sm:$0x1]  ;;  %v395_v38 = vld [vmem:[#allocation4 + $0x1] ss:$2 sm:$0x1] }
 0x335   :  { %v413_v35 = vld [vmem:[#allocation4 + $0x6] ss:$2 sm:$0x1]  ;;  %v411_v36 = vld [vmem:[#allocation4 + $0x5] ss:$2 sm:$0x1] }
 0x336   :  { %419 = vrot.lane.b32.xlu1 %v413_v35, %s1187_s0  ;;  %415 = vrot.lane.b32.xlu0 %v411_v36, %s1186_s4 }
 0x33a   :  { %403 = vrot.lane.b32.xlu1 %v397_v37, %s1187_s0  ;;  %399 = vrot.lane.b32.xlu0 %v395_v38, %s1186_s4 }
 0x3a8   :  { %v420_v40 = vpop.permute.xlu1 %419  ;;  %v416_v41 = vpop.permute.xlu0 %415 }
 0x3a9   :  { %v422_v42 = vsel %vm140_vm4, %v409_v39, %v416_v41  ;;  %v952_v41 = vld [vmem:[%s1730_s11] ss:$0 sm:$0xff] }
 0x3aa   :  { %v423_v43 = vsel %vm271_vm11, %v422_v42, %v420_v40  ;;  %v666_v40 = vld [vmem:[%s1731_s12] sm:$0xff] }
 0x3ab   :  { %v425_v47 = vrot.slane %v423_v43, 7 }
 0x3ac   :  { %v404_v45 = vpop.permute.xlu1 %403  ;;  %v400_v46 = vpop.permute.xlu0 %399 }
 0x3ad   :  { %v406_v48 = vsel %vm140_vm4, %v393_v44, %v400_v46  ;;  %vm525_vm4 = vcmask 517121  }
 0x3ae   :  { %v407_v49 = vsel %vm271_vm11, %v406_v48, %v404_v45 }
 0x3af   :  { %v427_v50 = vsel %vm79_vm1, %v407_v49, %v425_v47  ;;  %v775_v47 = vld [vmem:[%s1733_s14 + $0x78] sm:$0xff]  ;;  %v774_v49 = vld [vmem:[%s1733_s14 + $0x70] sm:$0xff] }
 0x3b0   :  { %1090 = vmatmul.mubr.msk.f32.vlgmr.msra.gmra.mxu0 %vm313_vm13, %v427_v50  ;;  %v773_v50 = vld [vmem:[%s1733_s14 + $0x68] sm:$0xff] }
 0x3b1   :  { %1110 = vmatprep.mubr.msk.f32.mxu0 %vm1184_vm6, %v1182_v5  ;;  %1093 = vmatpush3.msk.msra.mxu0 %vm161_vm7, %v674_v22 }
 0x3b2   :  { %1094 = vmatprep.subr.mxu0 %v1182_v5 }
 0x3b3   :  { %1095 = vmatpush3.msra.mxu0 %v673_v23 }
 0x3b4   :  { %1096 = vmatprep.subr.mxu0 %v1182_v5 }
 0x3b5   :  { %1097 = vmatpush3.msra.mxu0 %v672_v25 }
 0x3b6   :  { %1098 = vmatprep.subr.mxu0 %v1182_v5 }
 0x3b7   :  { %1099 = vmatpush3.msra.mxu0 %v671_v26 }
 0x3b8   :  { %1100 = vmatprep.subr.mxu0 %v1182_v5 }
 0x3b9   :  { %1101 = vmatpush3.msra.mxu0 %v670_v27 }
 0x3ba   :  { %1102 = vmatprep.subr.mxu0 %v1182_v5 }
 0x3bb   :  { %1103 = vmatpush3.msra.mxu0 %v669_v30 }
 0x3bc   :  { %1104 = vmatprep.subr.mxu0 %v1182_v5 }
 0x3bd   :  { %1105 = vmatpush3.msra.mxu0 %v668_v10 }
 0x3be   :  { %1106 = vmatprep.subr.mxu0 %v1182_v5 }
 0x3bf   :  { %1107 = vmatpush3.msra.mxu0 %v667_v11 }
 0x3c0   :  { %1108 = vmatprep.subr.mxu0 %v1182_v5 }
 0x3c1   :  { %1109 = vmatpush3.msra.mxu0 %v666_v40 }
 0x3c2   :  { %1113 = vmatprep.subr.mxu0 %v1182_v5 }
 0x470   :  { %v516_v13 = vpop.f32.mrf.mxu0 }
 0x471   :  { %v517_v14 = vadd.f32 %v950_v12, %v516_v13  ;;  %v958_v13 = vld [vmem:[%s1736_s17] ss:$0 sm:$0xff] }
 0x472   :  { %v1091_v17 = vpop.f32.mrf.mxu0 }
 0x473   :  { %v520_v20 = vmax.f32 %v517_v14, 0.0 }
 0x475   :  { %524 = vst.msk [vmem:[#allocation5 + $0x1] sm:$0x1] %vm523_vm3, %v520_v20 }
 0x476   :  { %526 = vst.msk [vmem:[#allocation5 + $0x3] sm:$0x2] %vm525_vm4, %v520_v20 }
 0x47c   :  { %v529_v29 = vld [vmem:[#allocation5 + $0x1] ss:$2 sm:$0x1] }
 0x47d   :  { %v540_v28 = vld [vmem:[#allocation5 + $0x4] ss:$2 sm:$0x1]  ;;  %533 = vrot.lane.b32.xlu1 %v529_v29, %s1187_s0 }
 0x47e   :  { %544 = vrot.lane.b32.xlu0 %v540_v28, %s1187_s0 }
 0x482   :  { %662 = vrot.lane.b32.xlu0 %v80_v31, %s1187_s0 }
 0x4ef   :  { %v534_v35 = vpop.permute.xlu1 %533 }
 0x4f0   :  { %v545_v33 = vpop.permute.xlu0 %544  ;;  %v536_v38 = vsel %vm271_vm11, %v527_v34, %v534_v35 }
 0x4f1   :  { %v547_v36 = vsel %vm271_vm11, %v538_v32, %v545_v33 }
 0x4f2   :  { %v550_v37 = vrot.slane %v547_v36, 7 }
 0x4f4   :  { %v554_v39 = vsel %vm79_vm1, %v536_v38, %v550_v37  ;;  %v663_v45 = vpop.permute.xlu0 %662 }
 0x4f5   :  { %655 = vmatmul.mubr.f32.vlgmr.msra.gmra.mxu1 %v554_v39 }
 0x4f6   :  { %1152 = vmatprep.mubr.msk.f32.mxu1 %vm1184_vm6, %v1182_v5  ;;  %1149 = vmatpush3.msra.mxu1 %v854_v0 }
 0x4f7   :  { %1150 = vmatprep.subr.mxu1 %v1182_v5 }
 0x4f8   :  { %1151 = vmatpush3.msra.mxu1 %v853_v7 }
 0x5b5   :  { %v656_v42 = vpop.f32.mrf.mxu1 }
 0x5b6   :  { %v657_v43 = vadd.f32 %v952_v41, %v656_v42 }
 0x5b7   :  { %v658_v44 = vpop.f32.mrf.mxu1 }
 0x5b8   :  { %v660_v46 = vmax.f32 %v657_v43, 0.0 }
 0x5ba   :  { %v665_v48 = vsel %vm271_vm11, %v660_v46, %v663_v45 }
 0x5bb   :  { %1111 = vmatmul.mubr.msk.f32.vlgmr.msra.gmra.mxu0 %vm682_vm5, %v665_v48 }
 0x5bc   :  { %1114 = vmatpush3.msra.mxu0 %v775_v47  ;;  %1145 = vmatprep.mubr.msk.f32.mxu0 %vm1184_vm6, %v1182_v5 }
 0x5bd   :  { %1115 = vmatprep.subr.mxu0 %v1182_v5 }
 0x5be   :  { %1116 = vmatpush3.msra.mxu0 %v774_v49 }
 0x5bf   :  { %1117 = vmatprep.subr.mxu0 %v1182_v5 }
 0x5c0   :  { %1118 = vmatpush3.msra.mxu0 %v773_v50 }
 0x5c1   :  { %1119 = vmatprep.subr.mxu0 %v1182_v5 }
 0x5c2   :  { %1120 = vmatpush3.msra.mxu0 %v772_v51 }
 0x5c3   :  { %1121 = vmatprep.subr.mxu0 %v1182_v5 }
 0x5c4   :  { %1122 = vmatpush3.msra.mxu0 %v771_v52 }
 0x5c5   :  { %1123 = vmatprep.subr.mxu0 %v1182_v5 }
 0x5c6   :  { %1124 = vmatpush3.msra.mxu0 %v770_v53 }
 0x5c7   :  { %1125 = vmatprep.subr.mxu0 %v1182_v5 }
 0x5c8   :  { %1126 = vmatpush3.msra.mxu0 %v769_v54 }
 0x5c9   :  { %1127 = vmatprep.subr.mxu0 %v1182_v5 }
 0x5ca   :  { %1128 = vmatpush3.msra.mxu0 %v768_v55 }
 0x5cb   :  { %1129 = vmatprep.subr.mxu0 %v1182_v5 }
 0x5cc   :  { %1130 = vmatpush3.msra.mxu0 %v767_v56 }
 0x5cd   :  { %1131 = vmatprep.subr.mxu0 %v1182_v5 }
 0x5ce   :  { %1132 = vmatpush3.msra.mxu0 %v766_v57 }
 0x5cf   :  { %1133 = vmatprep.subr.mxu0 %v1182_v5 }
 0x5d0   :  { %1134 = vmatpush3.msra.mxu0 %v765_v58 }
 0x5d1   :  { %1135 = vmatprep.subr.mxu0 %v1182_v5 }
 0x5d2   :  { %1136 = vmatpush3.msra.mxu0 %v764_v59 }
 0x5d3   :  { %1137 = vmatprep.subr.mxu0 %v1182_v5 }
 0x5d4   :  { %1138 = vmatpush3.msra.mxu0 %v763_v60 }
 0x5d5   :  { %1139 = vmatprep.subr.mxu0 %v1182_v5 }
 0x5d6   :  { %1140 = vmatpush3.msra.mxu0 %v762_v61 }
 0x5d7   :  { %1141 = vmatprep.subr.mxu0 %v1182_v5 }
 0x5d8   :  { %1142 = vmatpush3.msra.mxu0 %v761_v62 }
 0x5d9   :  { %1143 = vmatprep.subr.mxu0 %v1182_v5 }
 0x5da   :  { %1144 = vmatpush3.msra.mxu0 %v760_v63 }
 0x67b   :  { %v755_v2 = vpop.f32.mrf.mxu0 }
 0x67c   :  { %v756_v3 = vadd.f32 %v954_v1, %v755_v2 }
 0x67d   :  { %v1112_v4 = vpop.f32.mrf.mxu0 }
 0x67e   :  { %1164 = vtanh.f32 %v756_v3 }
 0x68b   :  { %v1165_v6 = vpop.eup %1164 }
 0x68c   :  { %1146 = vmatmul.mubr.f32.vlgmr.msra.gmra.mxu0 %v1165_v6 }
 0x74c   :  { %v849_v5 = vpop.f32.mrf.mxu0 }
 0x74d   :  { %v850_v9 = vadd.f32 %v957_v8, %v849_v5 }
 0x74e   :  { %v1147_v12 = vpop.f32.mrf.mxu0 }
 0x74f   :  { %1153 = vmatmul.mubr.msk.f32.vlgmr.msra.gmra.mxu1 %vm81_vm0, %v850_v9 }
 0x80f   :  { %v931_v14 = vpop.f32.mrf.mxu1 }
 0x810   :  { %v932_v15 = vadd.f32 %v958_v13, %v931_v14 }
 0x811   :  { %v1154_v16 = vpop.f32.mrf.mxu1 }
 0x812   :  { %935 = vst [vmem:[%s1737_s18] sm:$0x3] %v932_v15 }

</bundles_post_ra>
